<compile_context>
chip_gen: v5e
topology: v5e:2x2
jax: 0.10.0
libtpu: 0.0.40
codegen_flags: <defaults>
</compile_context>

<pallas_src>
import math
import functools

import jax
import jax.numpy as jnp
from jax.experimental import pallas as pl
from jax.experimental.pallas import tpu as pltpu


_VMEM_LIMIT_BYTES = 48 * 1024 * 1024   # > 32 MiB scoped default, < v7x 64 MiB/TC
_MASK_VALUE = -1e30                    # finite "-inf" (avoids inf-inf NaNs)


# ------------------------------ tiling utils ------------------------------

def _tile(dim, target, multiple):
    """Largest tile <= target that divides `dim` and is a multiple of
    `multiple`; falls back to the full dim (always a legal block size)."""
    if dim <= target:
        return dim
    t = (target // multiple) * multiple
    while t >= multiple:
        if dim % t == 0:
            return t
        t -= multiple
    return dim


# --------------------------- tiled matmul kernel ---------------------------

def _matmul_kernel(x_ref, w_ref, o_ref, acc_ref):
    # Grid: (M-tiles, N-tiles, K-tiles); K is innermost / "arbitrary".
    @pl.when(pl.program_id(2) == 0)
    def _():
        acc_ref[...] = jnp.zeros_like(acc_ref)

    acc_ref[...] += jnp.dot(x_ref[...], w_ref[...],
                            preferred_element_type=jnp.float32)

    @pl.when(pl.program_id(2) == pl.num_programs(2) - 1)
    def _():
        o_ref[...] = acc_ref[...].astype(o_ref.dtype)


def matmul(x, w_t, *, tm_target=512, tn_target=256, tk_target=512):
    # x: (M, K), w_t: (K, N) pre-transposed weight -> (M, N)
    M, K = x.shape
    K2, N = w_t.shape
    assert K == K2
    tm = _tile(M, tm_target, 8)
    tn = _tile(N, tn_target, 128)
    tk = _tile(K, tk_target, 128)
    grid = (M // tm, N // tn, K // tk)
    return pl.pallas_call(
        _matmul_kernel,
        out_shape=jax.ShapeDtypeStruct((M, N), x.dtype),
        grid_spec=pltpu.PrefetchScalarGridSpec(
            num_scalar_prefetch=0,
            grid=grid,
            in_specs=[pl.BlockSpec((tm, tk), lambda i, j, k: (i, k)),
                      pl.BlockSpec((tk, tn), lambda i, j, k: (k, j))],
            out_specs=pl.BlockSpec((tm, tn), lambda i, j, k: (i, j)),
            scratch_shapes=[pltpu.VMEM((tm, tn), jnp.float32)]),
        compiler_params=pltpu.CompilerParams(
            dimension_semantics=("parallel", "parallel", "arbitrary"),
            vmem_limit_bytes=_VMEM_LIMIT_BYTES),
    )(x, w_t)


# ------------------------------- RoPE kernel -------------------------------
# out = x * cos + rotate_half(x) * sin  ==  x @ build_rotary_matrix(cos, sin)
# rotate_half is done on the VPU/XLU (lane slice + concat), not the MXU.

def _rope_kernel(x_ref, cos_ref, sin_ref, o_ref):
    x = x_ref[...]                         # (tr, NHEADS, D)
    cos = cos_ref[...][:, None, :]         # (tr, 1, D) broadcast across heads
    sin = sin_ref[...][:, None, :]
    half = x.shape[-1] // 2
    rot = jnp.concatenate([-x[..., half:], x[..., :half]], axis=-1)
    o_ref[...] = (x * cos + rot * sin).astype(o_ref.dtype)


def apply_rope(x3d, cos, sin, *, tr_target=256):
    # x3d: (M, NHEADS, D); cos/sin: (M, D) shared across heads (no jnp.repeat:
    # the cos/sin BlockSpecs simply have no head axis).
    M, NHEADS, D = x3d.shape
    tr = _tile(M, tr_target, 8)
    return pl.pallas_call(
        _rope_kernel,
        out_shape=jax.ShapeDtypeStruct((M, NHEADS, D), x3d.dtype),
        grid=(M // tr,),
        in_specs=[pl.BlockSpec((tr, NHEADS, D), lambda i: (i, 0, 0)),
                  pl.BlockSpec((tr, D), lambda i: (i, 0)),
                  pl.BlockSpec((tr, D), lambda i: (i, 0))],
        out_specs=pl.BlockSpec((tr, NHEADS, D), lambda i: (i, 0, 0)),
        compiler_params=pltpu.CompilerParams(
            dimension_semantics=("parallel",),
            vmem_limit_bytes=_VMEM_LIMIT_BYTES),
    )(x3d, cos, sin)


def rotary_cos_sin(kv_seq_len, head_dim, theta, dtype=jnp.float32):
    inv_freq = 1.0 / (theta ** (jnp.arange(0, head_dim, 2, dtype=jnp.float32)
                                / head_dim))
    t = jnp.arange(kv_seq_len, dtype=jnp.float32)
    freqs = jnp.outer(t, inv_freq)                   # (S, D/2)
    emb = jnp.concatenate([freqs, freqs], axis=-1)   # (S, D)
    return jnp.cos(emb).astype(dtype), jnp.sin(emb).astype(dtype)


# --------------------------- flash attention kernel ------------------------
# Grid: (B*NKV, q-tiles, kv-tiles).  All G query heads of one KV group are
# processed per invocation (GQA K/V reuse).  Causal mask built in-kernel;
# fully-masked kv tiles skipped.

def _flash_attn_kernel(q_ref, k_ref, v_ref, o_ref, m_scr, l_scr, acc_scr,
                       *, scale, tq, tkv, g):
    qi = pl.program_id(1)
    ki = pl.program_id(2)

    @pl.when(ki == 0)
    def _():
        m_scr[...] = jnp.full_like(m_scr, _MASK_VALUE)
        l_scr[...] = jnp.zeros_like(l_scr)
        acc_scr[...] = jnp.zeros_like(acc_scr)

    # Skip kv tiles that are entirely above the causal diagonal.
    @pl.when(ki * tkv <= (qi + 1) * tq - 1)
    def _():
        d = q_ref.shape[-1]
        q = q_ref[0, 0].reshape(g * tq, d)            # (G*tq, D), input dtype
        k = k_ref[0, 0]                               # (tkv, D)
        v = v_ref[0, 0]                               # (tkv, D)

        s = jax.lax.dot_general(
            q, k, dimension_numbers=(((1,), (1,)), ((), ())),
            preferred_element_type=jnp.float32) * scale     # (G*tq, tkv) f32

        # In-kernel causal mask (no HBM mask traffic).
        rows = qi * tq + (
            jax.lax.broadcasted_iota(jnp.int32, (g * tq, tkv), 0) % tq)
        cols = ki * tkv + jax.lax.broadcasted_iota(jnp.int32, (g * tq, tkv), 1)
        s = jnp.where(cols <= rows, s, _MASK_VALUE)

        m_prev = m_scr[...]                           # (G*tq, 1)
        m_new = jnp.maximum(m_prev, jnp.max(s, axis=-1, keepdims=True))
        alpha = jnp.exp(m_prev - m_new)
        p = jnp.exp(s - m_new)                        # (G*tq, tkv) f32

        l_scr[...] = alpha * l_scr[...] + jnp.sum(p, axis=-1, keepdims=True)
        acc_scr[...] = alpha * acc_scr[...] + jnp.dot(
            p.astype(v.dtype), v, preferred_element_type=jnp.float32)
        m_scr[...] = m_new

    @pl.when(ki == pl.num_programs(2) - 1)
    def _():
        inv_l = pl.reciprocal(l_scr[...], approx=True)
        out = (acc_scr[...] * inv_l).reshape(g, tq, acc_scr.shape[-1])
        o_ref[0, 0] = out.astype(o_ref.dtype)


def flash_attention(q, k, v, *, head_dim, q_rows_target=512, kv_tile_target=512):
    # q: (B, NKV, G, S, D); k, v: (B, NKV, Sk, D).  Causal prefill (Sk == S).
    B, NKV, G, S, D = q.shape
    Sk = k.shape[2]
    assert Sk == S, "prefill only (no kv cache)"
    tq = _tile(S, max(8, q_rows_target // G), 8)     # keep G*tq ~ q_rows_target
    tkv = _tile(Sk, kv_tile_target, 128)
    grid = (B * NKV, S // tq, Sk // tkv)
    scale = 1.0 / math.sqrt(head_dim)
    kernel = functools.partial(_flash_attn_kernel, scale=scale,
                               tq=tq, tkv=tkv, g=G)
    return pl.pallas_call(
        kernel,
        out_shape=jax.ShapeDtypeStruct((B, NKV, G, S, D), q.dtype),
        grid_spec=pltpu.PrefetchScalarGridSpec(
            num_scalar_prefetch=0,
            grid=grid,
            in_specs=[
                pl.BlockSpec((1, 1, G, tq, D),
                             lambda bh, qi, ki: (bh // NKV, bh % NKV, 0, qi, 0)),
                pl.BlockSpec((1, 1, tkv, D),
                             lambda bh, qi, ki: (bh // NKV, bh % NKV, ki, 0)),
                pl.BlockSpec((1, 1, tkv, D),
                             lambda bh, qi, ki: (bh // NKV, bh % NKV, ki, 0)),
            ],
            out_specs=pl.BlockSpec(
                (1, 1, G, tq, D),
                lambda bh, qi, ki: (bh // NKV, bh % NKV, 0, qi, 0)),
            scratch_shapes=[pltpu.VMEM((G * tq, 1), jnp.float32),   # running max
                            pltpu.VMEM((G * tq, 1), jnp.float32),   # running denom
                            pltpu.VMEM((G * tq, D), jnp.float32)]), # output accum
        compiler_params=pltpu.CompilerParams(
            dimension_semantics=("parallel", "parallel", "arbitrary"),
            vmem_limit_bytes=_VMEM_LIMIT_BYTES),
    )(q, k, v)


# --------------------- o_proj with fused head-merge -------------------------
# out[b, s, :] = sum_h attn[b, h, s, :] @ Wo_t[h*D:(h+1)*D, :]
# The (B,NH,S,D) -> (B,S,H) transpose is folded into the index_maps.

def _oproj_kernel(attn_ref, w_ref, o_ref, acc_ref):
    h = pl.program_id(3)

    @pl.when(h == 0)
    def _():
        acc_ref[...] = jnp.zeros_like(acc_ref)

    acc_ref[...] += jnp.dot(attn_ref[0, 0], w_ref[...],
                            preferred_element_type=jnp.float32)

    @pl.when(h == pl.num_programs(3) - 1)
    def _():
        o_ref[0] = acc_ref[...].astype(o_ref.dtype)


def o_proj_fused(attn, w_t, *, tm_target=512, tn_target=256):
    # attn: (B, NH, S, D) head-major; w_t: (NH*D, HOUT) pre-transposed weight.
    B, NH, S, D = attn.shape
    KH, HOUT = w_t.shape
    assert KH == NH * D
    tm = _tile(S, tm_target, 8)
    tn = _tile(HOUT, tn_target, 128)
    grid = (B, S // tm, HOUT // tn, NH)
    return pl.pallas_call(
        _oproj_kernel,
        out_shape=jax.ShapeDtypeStruct((B, S, HOUT), attn.dtype),
        grid_spec=pltpu.PrefetchScalarGridSpec(
            num_scalar_prefetch=0,
            grid=grid,
            in_specs=[pl.BlockSpec((1, 1, tm, D),
                                   lambda b, i, j, h: (b, h, i, 0)),
                      pl.BlockSpec((D, tn),
                                   lambda b, i, j, h: (h, j))],
            out_specs=pl.BlockSpec((1, tm, tn),
                                   lambda b, i, j, h: (b, i, j)),
            scratch_shapes=[pltpu.VMEM((tm, tn), jnp.float32)]),
        compiler_params=pltpu.CompilerParams(
            dimension_semantics=("parallel", "parallel", "parallel", "arbitrary"),
            vmem_limit_bytes=_VMEM_LIMIT_BYTES),
    )(attn, w_t)


# ------------------------------- JAX glue ----------------------------------

def prepare_weights(weights):
    """One-time host-side prep: fuse q/k/v weights and transpose to (in, out)."""
    w_qkv_t = jnp.concatenate(
        [weights["q_proj"], weights["k_proj"], weights["v_proj"]], axis=0).T
    return {"wqkv_t": w_qkv_t, "wo_t": weights["o_proj"].T}


def quant_attention_forward(params, hidden_states, position_ids,
                            num_heads, num_key_value_heads,
                            rope_theta=10000.0, attention_mask=None):
    # TODO(synk): attention_mask is ignored; the module is causal
    #             (is_causal=True) and the causal mask is built in-kernel.
    del attention_mask
    B, S, H = hidden_states.shape
    NH, NKV = num_heads, num_key_value_heads
    D = H // NH
    G = NH // NKV
    M = B * S

    # Fused QKV projection (single tiled MXU matmul, activation read once).
    x2d = hidden_states.reshape(M, H)
    qkv = matmul(x2d, params["wqkv_t"])               # (M, (NH + 2*NKV) * D)

    # RoPE on q and k in ONE kernel call; cos/sin shared across heads.
    kv_seq_len = S  # TODO(synk): past_key_value cache not implemented.
    cos_t, sin_t = rotary_cos_sin(kv_seq_len, D, rope_theta, hidden_states.dtype)
    cos = cos_t[position_ids].reshape(M, D)           # (M, D)
    sin = sin_t[position_ids].reshape(M, D)

    qk = qkv[:, :(NH + NKV) * D].reshape(M, NH + NKV, D)
    qk_rot = apply_rope(qk, cos, sin)                 # (M, NH + NKV, D)

    # Head-major layouts for attention.
    # TODO(synk): with production D >= 128 these transposes could be folded
    #             into the attention BlockSpecs; left to XLA here.
    q = (qk_rot[:, :NH].reshape(B, S, NH, D)
         .transpose(0, 2, 1, 3).reshape(B, NKV, G, S, D))       # (B,NKV,G,S,D)
    k = qk_rot[:, NH:].reshape(B, S, NKV, D).transpose(0, 2, 1, 3)  # (B,NKV,S,D)
    v = (qkv[:, (NH + NKV) * D:].reshape(B, S, NKV, D)
         .transpose(0, 2, 1, 3))                                 # (B,NKV,S,D)

    attn = flash_attention(q, k, v, head_dim=D)       # (B, NKV, G, S, D)

    # o_proj with the head-merge transpose folded into its index_maps
    # (reference pv_matmul(is_pvmat=True) merges heads before o_proj).
    out = o_proj_fused(attn.reshape(B, NH, S, D), params["wo_t"])
    return out


# --------------------------------- main -------------------------------------

if __name__ == "__main__":
    B, S, H = 2, 8, 32
    NH, NKV = 4, 2
    D = H // NH

    key = jax.random.PRNGKey(0)
    kx, kq, kk, kv_, ko = jax.random.split(key, 5)
    hidden = jax.random.normal(kx, (B, S, H), dtype=jnp.float32)
    weights = {
        "q_proj": 0.05 * jax.random.normal(kq, (NH * D, H), dtype=jnp.float32),
        "k_proj": 0.05 * jax.random.normal(kk, (NKV * D, H), dtype=jnp.float32),
        "v_proj": 0.05 * jax.random.normal(kv_, (NKV * D, H), dtype=jnp.float32),
        "o_proj": 0.05 * jax.random.normal(ko, (H, H), dtype=jnp.float32),
    }
    params = prepare_weights(weights)
    position_ids = jnp.broadcast_to(jnp.arange(S, dtype=jnp.int32), (B, S))

    out = quant_attention_forward(params, hidden, position_ids,
                                  num_heads=NH, num_key_value_heads=NKV)
    jax.block_until_ready(out)
    assert out.shape == (B, S, H)
    print("KERNEL_OK")
</pallas_src>

<mosaic_0001>
module attributes {stable_mosaic.version = 11 : i64} {
  func.func @_matmul_kernel(%arg0: i32, %arg1: i32, %arg2: i32, %arg3: memref<16x32xf32, #tpu.memory_space<vmem>>, %arg4: memref<32x64xf32, #tpu.memory_space<vmem>>, %arg5: memref<16x64xf32, #tpu.memory_space<vmem>>, %arg6: memref<16x64xf32, #tpu.memory_space<vmem>>) attributes {dimension_semantics = [#tpu.dimension_semantics<parallel>, #tpu.dimension_semantics<parallel>, #tpu.dimension_semantics<arbitrary>], iteration_bounds = array<i64: 1, 1, 1>, scalar_prefetch = 0 : i64, scratch_operands = 1 : i64, tpu.core_type = #tpu.core_type<tc>, window_params = [{transform_indices = @transform_0, window_bounds = array<i64: 16, 32>}, {transform_indices = @transform_1, window_bounds = array<i64: 32, 64>}, {transform_indices = @transform_2, window_bounds = array<i64: 16, 64>}]} {
    %c0_i32 = arith.constant 0 : i32
    %0 = arith.cmpi eq, %arg2, %c0_i32 : i32
    %1 = arith.extui %0 : i1 to i32
    %c0_i32_0 = arith.constant 0 : i32
    %2 = arith.cmpi ne, %1, %c0_i32_0 : i32
    scf.if %2 {
      %cst_10 = arith.constant 0.000000e+00 : f32
      %12 = vector.broadcast %cst_10 : f32 to vector<16x64xf32>
      %c0_11 = arith.constant 0 : index
      %c0_12 = arith.constant 0 : index
      %13 = vector.load %arg6[%c0_11, %c0_12] : memref<16x64xf32, #tpu.memory_space<vmem>>, vector<16x64xf32>
      tpu.vector_store %arg6[%c0_11, %c0_12], %12 {strides = array<i32>} : memref<16x64xf32, #tpu.memory_space<vmem>>, vector<16x64xf32>,
    } else {
    }
    %c0 = arith.constant 0 : index
    %c0_1 = arith.constant 0 : index
    %3 = vector.load %arg6[%c0, %c0_1] : memref<16x64xf32, #tpu.memory_space<vmem>>, vector<16x64xf32>
    %c0_2 = arith.constant 0 : index
    %c0_3 = arith.constant 0 : index
    %4 = vector.load %arg3[%c0_2, %c0_3] : memref<16x32xf32, #tpu.memory_space<vmem>>, vector<16x32xf32>
    %c0_4 = arith.constant 0 : index
    %c0_5 = arith.constant 0 : index
    %5 = vector.load %arg4[%c0_4, %c0_5] : memref<32x64xf32, #tpu.memory_space<vmem>>, vector<32x64xf32>
    %cst = arith.constant dense<0.000000e+00> : vector<16x64xf32>
    %6 = tpu.matmul %4, %5, %cst {dimension_numbers = #tpu.dot_dimension_numbers<[1], [0], [0], [1], [0, 0, 1, 1], [], []>} : vector<16x32xf32>, vector<32x64xf32>, vector<16x64xf32> -> vector<16x64xf32>
    %7 = arith.addf %3, %6 : vector<16x64xf32>
    %c0_6 = arith.constant 0 : index
    %c0_7 = arith.constant 0 : index
    %8 = vector.load %arg6[%c0_6, %c0_7] : memref<16x64xf32, #tpu.memory_space<vmem>>, vector<16x64xf32>
    tpu.vector_store %arg6[%c0_6, %c0_7], %7 {strides = array<i32>} : memref<16x64xf32, #tpu.memory_space<vmem>>, vector<16x64xf32>,
    %c0_i32_8 = arith.constant 0 : i32
    %9 = arith.cmpi eq, %arg2, %c0_i32_8 : i32
    %10 = arith.extui %9 : i1 to i32
    %c0_i32_9 = arith.constant 0 : i32
    %11 = arith.cmpi ne, %10, %c0_i32_9 : i32
    scf.if %11 {
      %c0_10 = arith.constant 0 : index
      %c0_11 = arith.constant 0 : index
      %12 = vector.load %arg6[%c0_10, %c0_11] : memref<16x64xf32, #tpu.memory_space<vmem>>, vector<16x64xf32>
      %c0_12 = arith.constant 0 : index
      %c0_13 = arith.constant 0 : index
      %13 = vector.load %arg5[%c0_12, %c0_13] : memref<16x64xf32, #tpu.memory_space<vmem>>, vector<16x64xf32>
      tpu.vector_store %arg5[%c0_12, %c0_13], %12 {strides = array<i32>} : memref<16x64xf32, #tpu.memory_space<vmem>>, vector<16x64xf32>,
    } else {
    }
    return
  }
  func.func @transform_0(%arg0: i32, %arg1: i32, %arg2: i32) -> (i32, i32) {
    %c0_i32 = arith.constant 0 : i32
    return %arg0, %arg2 : i32, i32
  }
  func.func @transform_1(%arg0: i32, %arg1: i32, %arg2: i32) -> (i32, i32) {
    %c0_i32 = arith.constant 0 : i32
    return %arg2, %arg1 : i32, i32
  }
  func.func @transform_2(%arg0: i32, %arg1: i32, %arg2: i32) -> (i32, i32) {
    %c0_i32 = arith.constant 0 : i32
    return %arg0, %arg1 : i32, i32
  }
}

</mosaic_0001>

<bundles_post_ra>
// kernel: tpu_custom_call.1
= control target key start
LH: loop header
LB: loop body
LE: loop exit
PB: predicated region body
PF: predicated region fallthrough
CT: control target
= control target key end

     0   :  { %7 = vsyncpa [#allocation4], 0  ;;  %s256_s0 = inlined_call_operand.hbm [shape: f32[16,32], index: 0, kind: input, shape index: {}]   ;;  %s257_s1 = inlined_call_operand.hbm [shape: f32[32,64], index: 1, kind: input, shape index: {}]   ;;  %s258_s2 = inlined_call_operand.hbm [shape: f32[16,64], index: 2, kind: output, shape index: {}]  }
   0x1   :  { %8 = vsyncpa [#allocation7], 0 }
   0x2   :  { %9 = vsyncpa [#allocation5], 0  ;;  %s14_s11 = sshll.u32 %s256_s0, 4  ;;  %s211_s12 = smov [#allocation3]   ;;  %s15_s11 = int_to_ptr.hbm [resolvable:$true] %s14_s11 }
   0x3   :  { %s16_s13 = sshll.u32 %s211_s12, 4  ;;  %s27_s16 = sshll.u32 %s257_s1, 4  ;;  %s17_s13 = int_to_ptr.vmem [resolvable:$true] %s16_s13  ;;  %s28_s16 = int_to_ptr.hbm [resolvable:$true] %s27_s16 }
   0x4   :  { %s212_s17 = smov 128   ;;  %s213_s18 = smov 8  }
   0x5   :  { %22 = dma.hbm_to_vmem [thread:$0]  %s15_s11, 256, %s17_s13, [#allocation4], %s212_s17, %s212_s17, %s213_s18  }
   0x6   :  { %s214_s19 = smov [#allocation6]  }
   0x7   :  { %s29_s20 = sshll.u32 %s214_s19, 4  ;;  %s30_s20 = int_to_ptr.vmem [resolvable:$true] %s29_s20 }
   0x8   :  { %35 = dma.hbm_to_vmem [thread:$0]  %s28_s16, 512, %s30_s20, [#allocation7], %s212_s17, %s212_s17, %s213_s18  }
   0x9   :  { %205 = dma.done.wait [#allocation4], 256  }
   0xa   :  { %206 = vsyncadd [#allocation4], 4294967040 }
   0xb   :  { %207 = dma.done.wait [#allocation7], 512  }
   0xc   :  { %208 = vsyncadd [#allocation7], 4294966784  ;;  %vm48_vm0 = vcmask 523264   ;;  %v215_v0 = vmov 0.0   ;;  %v58_v1 = vld [vmem:[#allocation6 + $0x18] sm:$0xff]  ;;  %v57_v2 = vld [vmem:[#allocation6 + $0x10] sm:$0xff] }
   0xd   :  { %49 = vst.msk [vmem:[#allocation2] sm:$0xff] %vm48_vm0, %v215_v0  ;;  %78 = vmatpush.msra.mxu0 %v58_v1  ;;  %123 = vmatpush.msra.mxu1 %v58_v1  ;;  %v56_v3 = vld [vmem:[#allocation6 + $0x8] sm:$0xff]  ;;  %v55_v4 = vld [vmem:[#allocation6] sm:$0xff]  ;;  %v53_v5 = vld [vmem:[#allocation3] sm:$0xff]  ;;  %vm59_vm1 = vcmask 261120   ;;  %s216_s0 = smov [#allocation8]  }
   0xe   :  { %50 = vst.msk [vmem:[#allocation2 + $0x8] sm:$0xff] %vm48_vm0, %v215_v0  ;;  %v54_v6 = vld [vmem:[#allocation3 + $0x8] sm:$0xff]  ;;  %s105_s1 = sshll.u32 %s216_s0, 4  ;;  %s107_s23 = sshll.u32 %s258_s2, 4  ;;  %s106_s1 = int_to_ptr.vmem [resolvable:$true] %s105_s1  ;;  %s108_s23 = int_to_ptr.hbm [resolvable:$true] %s107_s23 }
   0xf   :  { %79 = vmatpush.msra.mxu0 %v57_v2  ;;  %124 = vmatpush.msra.mxu1 %v57_v2 }
  0x11   :  { %80 = vmatpush.msra.mxu0 %v56_v3  ;;  %125 = vmatpush.msra.mxu1 %v56_v3 }
  0x13   :  { %81 = vmatpush.msra.mxu0 %v55_v4  ;;  %126 = vmatpush.msra.mxu1 %v55_v4 }
  0x14   :  { %121 = vmatmul.msk.f32.vlgmr.msra.gmra.mxu0 %vm59_vm1, %v53_v5  ;;  %122 = vmatmul.msk.f32.vlgmr.msra.gmra.mxu1 %vm59_vm1, %v54_v6  ;;  %v51_v7 = vld [vmem:[#allocation2] sm:$0xff] }
  0x15   :  { %v52_v8 = vld [vmem:[#allocation2 + $0x8] sm:$0xff] }
  0x91   :  { %v83_v9 = vpop.f32.mrf.mxu0  ;;  %v86_v10 = vpop.f32.mrf.mxu1 }
  0x92   :  { %v89_v11 = vadd.f32 %v83_v9, %v51_v7  ;;  %v90_v12 = vadd.f32 %v86_v10, %v52_v8 }
  0x94   :  { %92 = vst.msk [vmem:[#allocation2] sm:$0xff] %vm48_vm0, %v89_v11 }
  0x95   :  { %93 = vst.msk [vmem:[#allocation2 + $0x8] sm:$0xff] %vm48_vm0, %v90_v12 }
  0x9b   :  { %v97_v13 = vld [vmem:[#allocation2] sm:$0xff] }
  0x9c   :  { %v98_v14 = vld [vmem:[#allocation2 + $0x8] sm:$0xff]  ;;  %99 = vst.msk [vmem:[#allocation8] sm:$0xff] %vm48_vm0, %v97_v13 }
  0x9d   :  { %100 = vst.msk [vmem:[#allocation8 + $0x8] sm:$0xff] %vm48_vm0, %v98_v14 }
  0x9e   :  { %113 = dma.vmem_to_hbm [thread:$0]  %s106_s1, 256, %s108_s23, [#allocation5], %s212_s17, %s212_s17, %s213_s18  }
  0x9f   :  { %209 = dma.done.wait [#allocation5], 256  }
  0xa0   :  { %210 = vsyncadd [#allocation5], 4294967040 }
  0xa1   :  { %118 = vsyncpa [#allocation4], 1 }
  0xa2   :  { %119 = vsyncpa [#allocation7], 1 }
  0xa3   :  { %120 = vsyncpa [#allocation5], 1 }

</bundles_post_ra>
